<compile_context>
chip_gen: v7x
topology: tpu7x:2x2x1
jax: 0.10.0
libtpu: 0.0.40
codegen_flags: <defaults>
</compile_context>

<pallas_src>
import jax
import jax.numpy as jnp
from jax.experimental import pallas as pl
from jax.experimental.pallas import tpu as pltpu

MAX_LANE_TILE = 65536   # batch tile along the 128-wide lane axis


def _round_up(n, m):
    return ((n + m - 1) // m) * m


def mlp_intermediate_kernel(p_ref, x_ref, out_ref):
    """p_ref: SMEM (44,) f32 packed params; x_ref: (1, T); out_ref: (11, T).

    Packed layout (row-major PyTorch (out, in) weights):
      [0:3]   w1 (3x1)    [3:6]   b1
      [6:21]  w2 (5x3)    [21:26] b2
      [26:41] w3 (3x5)    [41:44] b3
    """
    x = x_ref[...]                                    # (1, T)

    # Layer 0: Linear(1 -> 3); pre-ReLU captured into rows 0..2.
    a1 = []
    for o in range(3):
        r = p_ref[o] * x + p_ref[3 + o]               # scalar splat FMA
        out_ref[o:o + 1, :] = r
        a1.append(jnp.maximum(r, 0.0))

    # Layer 2: Linear(3 -> 5); pre-ReLU captured into rows 3..7.
    a2 = []
    for o in range(5):
        acc = p_ref[6 + 3 * o] * a1[0]
        acc = acc + p_ref[7 + 3 * o] * a1[1]
        acc = acc + p_ref[8 + 3 * o] * a1[2]
        r = acc + p_ref[21 + o]
        out_ref[3 + o:4 + o, :] = r
        a2.append(jnp.maximum(r, 0.0))

    # Layer 4: Linear(5 -> 3); final output into rows 8..10.
    for o in range(3):
        acc = p_ref[26 + 5 * o] * a2[0]
        for j in range(1, 5):
            acc = acc + p_ref[26 + 5 * o + j] * a2[j]
        out_ref[8 + o:9 + o, :] = acc + p_ref[41 + o]


def my_model_forward(x, params, *, batch_major_outputs=True):
    """x: (B, 1) float32.  Weights in PyTorch (out, in) layout, biases (out,).

    Returns (out, [h1, h2, out]).  With batch_major_outputs=True (default,
    matches the PyTorch module) shapes are (B,3),(B,5),(B,3); with False the
    transpose relayout is skipped and shapes are (3,B),(5,B),(3,B).
    """
    B = x.shape[0]

    # Adaptive lane tile: tiny batches stay tiny; big batches get 64K lanes.
    tile = min(MAX_LANE_TILE, _round_up(max(B, 1), 1024))
    n_tiles = pl.cdiv(B, tile)
    b_pad = n_tiles * tile

    # Batch onto the lane axis; single fused pad to a tile multiple.
    xt = x.reshape(B, 1).T.astype(jnp.float32)        # (1, B)
    if b_pad != B:
        xt = jnp.pad(xt, ((0, 0), (0, b_pad - B)))

    # One packed SMEM operand holding all 44 parameters.
    p_flat = jnp.concatenate([
        params["w1"].reshape(-1), params["b1"].reshape(-1),
        params["w2"].reshape(-1), params["b2"].reshape(-1),
        params["w3"].reshape(-1), params["b3"].reshape(-1),
    ]).astype(jnp.float32)                            # (44,)

    fused = pl.pallas_call(
        mlp_intermediate_kernel,
        out_shape=jax.ShapeDtypeStruct((11, b_pad), jnp.float32),
        grid_spec=pltpu.PrefetchScalarGridSpec(
            num_scalar_prefetch=0,
            grid=(n_tiles,),
            in_specs=[
                pl.BlockSpec(memory_space=pltpu.MemorySpace.SMEM),  # params
                pl.BlockSpec((1, tile), lambda i: (0, i)),          # x
            ],
            out_specs=pl.BlockSpec((11, tile), lambda i: (0, i)),   # fused out
        ),
        compiler_params=pltpu.CompilerParams(
            dimension_semantics=("parallel",),
            vmem_limit_bytes=48 * 1024 * 1024,
        ),
    )(p_flat, xt)

    h1 = fused[0:3, :B]
    h2 = fused[3:8, :B]
    out = fused[8:11, :B]
    if batch_major_outputs:
        # Layout plumbing only (PyTorch parity); skip via the kwarg if the
        # consumer can take (feat, B).
        h1, h2, out = h1.T, h2.T, out.T
    return out, [h1, h2, out]


def init_params(key):
    """Deterministic init mimicking nn.Linear's uniform(-1/sqrt(fan_in), +).
    Weights stored in PyTorch (out, in) layout; biases (out,)."""
    ks = jax.random.split(key, 6)

    def lin(kw, kb, fan_in, fan_out):
        bound = 1.0 / jnp.sqrt(jnp.float32(fan_in))
        w = jax.random.uniform(kw, (fan_out, fan_in), jnp.float32, -bound, bound)
        b = jax.random.uniform(kb, (fan_out,), jnp.float32, -bound, bound)
        return w, b

    w1, b1 = lin(ks[0], ks[1], 1, 3)
    w2, b2 = lin(ks[2], ks[3], 3, 5)
    w3, b3 = lin(ks[4], ks[5], 5, 3)
    return {"w1": w1, "b1": b1, "w2": w2, "b2": b2, "w3": w3, "b3": b3}


def reference_forward(x, p):
    h1 = x @ p["w1"].T + p["b1"]
    a1 = jnp.maximum(h1, 0.0)
    h2 = a1 @ p["w2"].T + p["b2"]
    a2 = jnp.maximum(h2, 0.0)
    out = a2 @ p["w3"].T + p["b3"]
    return out, [h1, h2, out]


if __name__ == "__main__":
    key = jax.random.PRNGKey(0)
    k_params, k_x = jax.random.split(key)

    params = init_params(k_params)
    # torch.rand(1, 1) analogue, with batch=2 to exercise broadcasting/padding.
    x = jax.random.uniform(k_x, (2, 1), jnp.float32)

    out, results = my_model_forward(x, params)
    jax.block_until_ready(out)
    jax.block_until_ready(results)

    ref_out, ref_results = reference_forward(x, params)
    assert jnp.allclose(out, ref_out, atol=1e-5, rtol=1e-5)
    for r, rr in zip(results, ref_results):
        assert jnp.allclose(r, rr, atol=1e-5, rtol=1e-5)

    print("KERNEL_OK")
</pallas_src>

<mosaic_0001>
module attributes {stable_mosaic.version = 11 : i64} {
  func.func @mlp_intermediate_kernel(%arg0: i32, %arg1: memref<44xf32, #tpu.memory_space<smem>>, %arg2: memref<1x1024xf32, #tpu.memory_space<vmem>>, %arg3: memref<11x1024xf32, #tpu.memory_space<vmem>>) attributes {dimension_semantics = [#tpu.dimension_semantics<parallel>], iteration_bounds = array<i64: 1>, scalar_prefetch = 0 : i64, scratch_operands = 0 : i64, tpu.core_type = #tpu.core_type<tc>, window_params = [{transform_indices = @transform_0, window_bounds = array<i64: 44>}, {transform_indices = @transform_1, window_bounds = array<i64: 1, 1024>}, {transform_indices = @transform_2, window_bounds = array<i64: 11, 1024>}]} {
    %c0 = arith.constant 0 : index
    %c0_0 = arith.constant 0 : index
    %0 = vector.load %arg2[%c0, %c0_0] : memref<1x1024xf32, #tpu.memory_space<vmem>>, vector<1x1024xf32>
    %c0_1 = arith.constant 0 : index
    %1 = memref.load %arg1[%c0_1] : memref<44xf32, #tpu.memory_space<smem>>
    %2 = vector.broadcast %1 : f32 to vector<1x1024xf32>
    %3 = arith.mulf %2, %0 : vector<1x1024xf32>
    %c3 = arith.constant 3 : index
    %4 = memref.load %arg1[%c3] : memref<44xf32, #tpu.memory_space<smem>>
    %5 = vector.broadcast %4 : f32 to vector<1x1024xf32>
    %6 = arith.addf %3, %5 : vector<1x1024xf32>
    %c0_2 = arith.constant 0 : index
    %c0_3 = arith.constant 0 : index
    %7 = vector.load %arg3[%c0_2, %c0_3] : memref<11x1024xf32, #tpu.memory_space<vmem>>, vector<1x1024xf32>
    tpu.vector_store %arg3[%c0_2, %c0_3], %6 {strides = array<i32>} : memref<11x1024xf32, #tpu.memory_space<vmem>>, vector<1x1024xf32>,
    %cst = arith.constant 0.000000e+00 : f32
    %8 = vector.broadcast %cst : f32 to vector<1x1024xf32>
    %9 = arith.maximumf %6, %8 : vector<1x1024xf32>
    %c1 = arith.constant 1 : index
    %10 = memref.load %arg1[%c1] : memref<44xf32, #tpu.memory_space<smem>>
    %11 = vector.broadcast %10 : f32 to vector<1x1024xf32>
    %12 = arith.mulf %11, %0 : vector<1x1024xf32>
    %c4 = arith.constant 4 : index
    %13 = memref.load %arg1[%c4] : memref<44xf32, #tpu.memory_space<smem>>
    %14 = vector.broadcast %13 : f32 to vector<1x1024xf32>
    %15 = arith.addf %12, %14 : vector<1x1024xf32>
    %c1_4 = arith.constant 1 : index
    %c0_5 = arith.constant 0 : index
    %16 = vector.load %arg3[%c1_4, %c0_5] : memref<11x1024xf32, #tpu.memory_space<vmem>>, vector<1x1024xf32>
    tpu.vector_store %arg3[%c1_4, %c0_5], %15 {strides = array<i32>} : memref<11x1024xf32, #tpu.memory_space<vmem>>, vector<1x1024xf32>,
    %cst_6 = arith.constant 0.000000e+00 : f32
    %17 = vector.broadcast %cst_6 : f32 to vector<1x1024xf32>
    %18 = arith.maximumf %15, %17 : vector<1x1024xf32>
    %c2 = arith.constant 2 : index
    %19 = memref.load %arg1[%c2] : memref<44xf32, #tpu.memory_space<smem>>
    %20 = vector.broadcast %19 : f32 to vector<1x1024xf32>
    %21 = arith.mulf %20, %0 : vector<1x1024xf32>
    %c5 = arith.constant 5 : index
    %22 = memref.load %arg1[%c5] : memref<44xf32, #tpu.memory_space<smem>>
    %23 = vector.broadcast %22 : f32 to vector<1x1024xf32>
    %24 = arith.addf %21, %23 : vector<1x1024xf32>
    %c2_7 = arith.constant 2 : index
    %c0_8 = arith.constant 0 : index
    %25 = vector.load %arg3[%c2_7, %c0_8] : memref<11x1024xf32, #tpu.memory_space<vmem>>, vector<1x1024xf32>
    tpu.vector_store %arg3[%c2_7, %c0_8], %24 {strides = array<i32>} : memref<11x1024xf32, #tpu.memory_space<vmem>>, vector<1x1024xf32>,
    %cst_9 = arith.constant 0.000000e+00 : f32
    %26 = vector.broadcast %cst_9 : f32 to vector<1x1024xf32>
    %27 = arith.maximumf %24, %26 : vector<1x1024xf32>
    %c6 = arith.constant 6 : index
    %28 = memref.load %arg1[%c6] : memref<44xf32, #tpu.memory_space<smem>>
    %29 = vector.broadcast %28 : f32 to vector<1x1024xf32>
    %30 = arith.mulf %29, %9 : vector<1x1024xf32>
    %c7 = arith.constant 7 : index
    %31 = memref.load %arg1[%c7] : memref<44xf32, #tpu.memory_space<smem>>
    %32 = vector.broadcast %31 : f32 to vector<1x1024xf32>
    %33 = arith.mulf %32, %18 : vector<1x1024xf32>
    %34 = arith.addf %30, %33 : vector<1x1024xf32>
    %c8 = arith.constant 8 : index
    %35 = memref.load %arg1[%c8] : memref<44xf32, #tpu.memory_space<smem>>
    %36 = vector.broadcast %35 : f32 to vector<1x1024xf32>
    %37 = arith.mulf %36, %27 : vector<1x1024xf32>
    %38 = arith.addf %34, %37 : vector<1x1024xf32>
    %c21 = arith.constant 21 : index
    %39 = memref.load %arg1[%c21] : memref<44xf32, #tpu.memory_space<smem>>
    %40 = vector.broadcast %39 : f32 to vector<1x1024xf32>
    %41 = arith.addf %38, %40 : vector<1x1024xf32>
    %c3_10 = arith.constant 3 : index
    %c0_11 = arith.constant 0 : index
    %42 = vector.load %arg3[%c3_10, %c0_11] : memref<11x1024xf32, #tpu.memory_space<vmem>>, vector<1x1024xf32>
    tpu.vector_store %arg3[%c3_10, %c0_11], %41 {strides = array<i32>} : memref<11x1024xf32, #tpu.memory_space<vmem>>, vector<1x1024xf32>,
    %cst_12 = arith.constant 0.000000e+00 : f32
    %43 = vector.broadcast %cst_12 : f32 to vector<1x1024xf32>
    %44 = arith.maximumf %41, %43 : vector<1x1024xf32>
    %c9 = arith.constant 9 : index
    %45 = memref.load %arg1[%c9] : memref<44xf32, #tpu.memory_space<smem>>
    %46 = vector.broadcast %45 : f32 to vector<1x1024xf32>
    %47 = arith.mulf %46, %9 : vector<1x1024xf32>
    %c10 = arith.constant 10 : index
    %48 = memref.load %arg1[%c10] : memref<44xf32, #tpu.memory_space<smem>>
    %49 = vector.broadcast %48 : f32 to vector<1x1024xf32>
    %50 = arith.mulf %49, %18 : vector<1x1024xf32>
    %51 = arith.addf %47, %50 : vector<1x1024xf32>
    %c11 = arith.constant 11 : index
    %52 = memref.load %arg1[%c11] : memref<44xf32, #tpu.memory_space<smem>>
    %53 = vector.broadcast %52 : f32 to vector<1x1024xf32>
    %54 = arith.mulf %53, %27 : vector<1x1024xf32>
    %55 = arith.addf %51, %54 : vector<1x1024xf32>
    %c22 = arith.constant 22 : index
    %56 = memref.load %arg1[%c22] : memref<44xf32, #tpu.memory_space<smem>>
    %57 = vector.broadcast %56 : f32 to vector<1x1024xf32>
    %58 = arith.addf %55, %57 : vector<1x1024xf32>
    %c4_13 = arith.constant 4 : index
    %c0_14 = arith.constant 0 : index
    %59 = vector.load %arg3[%c4_13, %c0_14] : memref<11x1024xf32, #tpu.memory_space<vmem>>, vector<1x1024xf32>
    tpu.vector_store %arg3[%c4_13, %c0_14], %58 {strides = array<i32>} : memref<11x1024xf32, #tpu.memory_space<vmem>>, vector<1x1024xf32>,
    %cst_15 = arith.constant 0.000000e+00 : f32
    %60 = vector.broadcast %cst_15 : f32 to vector<1x1024xf32>
    %61 = arith.maximumf %58, %60 : vector<1x1024xf32>
    %c12 = arith.constant 12 : index
    %62 = memref.load %arg1[%c12] : memref<44xf32, #tpu.memory_space<smem>>
    %63 = vector.broadcast %62 : f32 to vector<1x1024xf32>
    %64 = arith.mulf %63, %9 : vector<1x1024xf32>
    %c13 = arith.constant 13 : index
    %65 = memref.load %arg1[%c13] : memref<44xf32, #tpu.memory_space<smem>>
    %66 = vector.broadcast %65 : f32 to vector<1x1024xf32>
    %67 = arith.mulf %66, %18 : vector<1x1024xf32>
    %68 = arith.addf %64, %67 : vector<1x1024xf32>
    %c14 = arith.constant 14 : index
    %69 = memref.load %arg1[%c14] : memref<44xf32, #tpu.memory_space<smem>>
    %70 = vector.broadcast %69 : f32 to vector<1x1024xf32>
    %71 = arith.mulf %70, %27 : vector<1x1024xf32>
    %72 = arith.addf %68, %71 : vector<1x1024xf32>
    %c23 = arith.constant 23 : index
    %73 = memref.load %arg1[%c23] : memref<44xf32, #tpu.memory_space<smem>>
    %74 = vector.broadcast %73 : f32 to vector<1x1024xf32>
    %75 = arith.addf %72, %74 : vector<1x1024xf32>
    %c5_16 = arith.constant 5 : index
    %c0_17 = arith.constant 0 : index
    %76 = vector.load %arg3[%c5_16, %c0_17] : memref<11x1024xf32, #tpu.memory_space<vmem>>, vector<1x1024xf32>
    tpu.vector_store %arg3[%c5_16, %c0_17], %75 {strides = array<i32>} : memref<11x1024xf32, #tpu.memory_space<vmem>>, vector<1x1024xf32>,
    %cst_18 = arith.constant 0.000000e+00 : f32
    %77 = vector.broadcast %cst_18 : f32 to vector<1x1024xf32>
    %78 = arith.maximumf %75, %77 : vector<1x1024xf32>
    %c15 = arith.constant 15 : index
    %79 = memref.load %arg1[%c15] : memref<44xf32, #tpu.memory_space<smem>>
    %80 = vector.broadcast %79 : f32 to vector<1x1024xf32>
    %81 = arith.mulf %80, %9 : vector<1x1024xf32>
    %c16 = arith.constant 16 : index
    %82 = memref.load %arg1[%c16] : memref<44xf32, #tpu.memory_space<smem>>
    %83 = vector.broadcast %82 : f32 to vector<1x1024xf32>
    %84 = arith.mulf %83, %18 : vector<1x1024xf32>
    %85 = arith.addf %81, %84 : vector<1x1024xf32>
    %c17 = arith.constant 17 : index
    %86 = memref.load %arg1[%c17] : memref<44xf32, #tpu.memory_space<smem>>
    %87 = vector.broadcast %86 : f32 to vector<1x1024xf32>
    %88 = arith.mulf %87, %27 : vector<1x1024xf32>
    %89 = arith.addf %85, %88 : vector<1x1024xf32>
    %c24 = arith.constant 24 : index
    %90 = memref.load %arg1[%c24] : memref<44xf32, #tpu.memory_space<smem>>
    %91 = vector.broadcast %90 : f32 to vector<1x1024xf32>
    %92 = arith.addf %89, %91 : vector<1x1024xf32>
    %c6_19 = arith.constant 6 : index
    %c0_20 = arith.constant 0 : index
    %93 = vector.load %arg3[%c6_19, %c0_20] : memref<11x1024xf32, #tpu.memory_space<vmem>>, vector<1x1024xf32>
    tpu.vector_store %arg3[%c6_19, %c0_20], %92 {strides = array<i32>} : memref<11x1024xf32, #tpu.memory_space<vmem>>, vector<1x1024xf32>,
    %cst_21 = arith.constant 0.000000e+00 : f32
    %94 = vector.broadcast %cst_21 : f32 to vector<1x1024xf32>
    %95 = arith.maximumf %92, %94 : vector<1x1024xf32>
    %c18 = arith.constant 18 : index
    %96 = memref.load %arg1[%c18] : memref<44xf32, #tpu.memory_space<smem>>
    %97 = vector.broadcast %96 : f32 to vector<1x1024xf32>
    %98 = arith.mulf %97, %9 : vector<1x1024xf32>
    %c19 = arith.constant 19 : index
    %99 = memref.load %arg1[%c19] : memref<44xf32, #tpu.memory_space<smem>>
    %100 = vector.broadcast %99 : f32 to vector<1x1024xf32>
    %101 = arith.mulf %100, %18 : vector<1x1024xf32>
    %102 = arith.addf %98, %101 : vector<1x1024xf32>
    %c20 = arith.constant 20 : index
    %103 = memref.load %arg1[%c20] : memref<44xf32, #tpu.memory_space<smem>>
    %104 = vector.broadcast %103 : f32 to vector<1x1024xf32>
    %105 = arith.mulf %104, %27 : vector<1x1024xf32>
    %106 = arith.addf %102, %105 : vector<1x1024xf32>
    %c25 = arith.constant 25 : index
    %107 = memref.load %arg1[%c25] : memref<44xf32, #tpu.memory_space<smem>>
    %108 = vector.broadcast %107 : f32 to vector<1x1024xf32>
    %109 = arith.addf %106, %108 : vector<1x1024xf32>
    %c7_22 = arith.constant 7 : index
    %c0_23 = arith.constant 0 : index
    %110 = vector.load %arg3[%c7_22, %c0_23] : memref<11x1024xf32, #tpu.memory_space<vmem>>, vector<1x1024xf32>
    tpu.vector_store %arg3[%c7_22, %c0_23], %109 {strides = array<i32>} : memref<11x1024xf32, #tpu.memory_space<vmem>>, vector<1x1024xf32>,
    %cst_24 = arith.constant 0.000000e+00 : f32
    %111 = vector.broadcast %cst_24 : f32 to vector<1x1024xf32>
    %112 = arith.maximumf %109, %111 : vector<1x1024xf32>
    %c26 = arith.constant 26 : index
    %113 = memref.load %arg1[%c26] : memref<44xf32, #tpu.memory_space<smem>>
    %114 = vector.broadcast %113 : f32 to vector<1x1024xf32>
    %115 = arith.mulf %114, %44 : vector<1x1024xf32>
    %c27 = arith.constant 27 : index
    %116 = memref.load %arg1[%c27] : memref<44xf32, #tpu.memory_space<smem>>
    %117 = vector.broadcast %116 : f32 to vector<1x1024xf32>
    %118 = arith.mulf %117, %61 : vector<1x1024xf32>
    %119 = arith.addf %115, %118 : vector<1x1024xf32>
    %c28 = arith.constant 28 : index
    %120 = memref.load %arg1[%c28] : memref<44xf32, #tpu.memory_space<smem>>
    %121 = vector.broadcast %120 : f32 to vector<1x1024xf32>
    %122 = arith.mulf %121, %78 : vector<1x1024xf32>
    %123 = arith.addf %119, %122 : vector<1x1024xf32>
    %c29 = arith.constant 29 : index
    %124 = memref.load %arg1[%c29] : memref<44xf32, #tpu.memory_space<smem>>
    %125 = vector.broadcast %124 : f32 to vector<1x1024xf32>
    %126 = arith.mulf %125, %95 : vector<1x1024xf32>
    %127 = arith.addf %123, %126 : vector<1x1024xf32>
    %c30 = arith.constant 30 : index
    %128 = memref.load %arg1[%c30] : memref<44xf32, #tpu.memory_space<smem>>
    %129 = vector.broadcast %128 : f32 to vector<1x1024xf32>
    %130 = arith.mulf %129, %112 : vector<1x1024xf32>
    %131 = arith.addf %127, %130 : vector<1x1024xf32>
    %c41 = arith.constant 41 : index
    %132 = memref.load %arg1[%c41] : memref<44xf32, #tpu.memory_space<smem>>
    %133 = vector.broadcast %132 : f32 to vector<1x1024xf32>
    %134 = arith.addf %131, %133 : vector<1x1024xf32>
    %c8_25 = arith.constant 8 : index
    %c0_26 = arith.constant 0 : index
    %135 = vector.load %arg3[%c8_25, %c0_26] : memref<11x1024xf32, #tpu.memory_space<vmem>>, vector<1x1024xf32>
    tpu.vector_store %arg3[%c8_25, %c0_26], %134 {strides = array<i32>} : memref<11x1024xf32, #tpu.memory_space<vmem>>, vector<1x1024xf32>,
    %c31 = arith.constant 31 : index
    %136 = memref.load %arg1[%c31] : memref<44xf32, #tpu.memory_space<smem>>
    %137 = vector.broadcast %136 : f32 to vector<1x1024xf32>
    %138 = arith.mulf %137, %44 : vector<1x1024xf32>
    %c32 = arith.constant 32 : index
    %139 = memref.load %arg1[%c32] : memref<44xf32, #tpu.memory_space<smem>>
    %140 = vector.broadcast %139 : f32 to vector<1x1024xf32>
    %141 = arith.mulf %140, %61 : vector<1x1024xf32>
    %142 = arith.addf %138, %141 : vector<1x1024xf32>
    %c33 = arith.constant 33 : index
    %143 = memref.load %arg1[%c33] : memref<44xf32, #tpu.memory_space<smem>>
    %144 = vector.broadcast %143 : f32 to vector<1x1024xf32>
    %145 = arith.mulf %144, %78 : vector<1x1024xf32>
    %146 = arith.addf %142, %145 : vector<1x1024xf32>
    %c34 = arith.constant 34 : index
    %147 = memref.load %arg1[%c34] : memref<44xf32, #tpu.memory_space<smem>>
    %148 = vector.broadcast %147 : f32 to vector<1x1024xf32>
    %149 = arith.mulf %148, %95 : vector<1x1024xf32>
    %150 = arith.addf %146, %149 : vector<1x1024xf32>
    %c35 = arith.constant 35 : index
    %151 = memref.load %arg1[%c35] : memref<44xf32, #tpu.memory_space<smem>>
    %152 = vector.broadcast %151 : f32 to vector<1x1024xf32>
    %153 = arith.mulf %152, %112 : vector<1x1024xf32>
    %154 = arith.addf %150, %153 : vector<1x1024xf32>
    %c42 = arith.constant 42 : index
    %155 = memref.load %arg1[%c42] : memref<44xf32, #tpu.memory_space<smem>>
    %156 = vector.broadcast %155 : f32 to vector<1x1024xf32>
    %157 = arith.addf %154, %156 : vector<1x1024xf32>
    %c9_27 = arith.constant 9 : index
    %c0_28 = arith.constant 0 : index
    %158 = vector.load %arg3[%c9_27, %c0_28] : memref<11x1024xf32, #tpu.memory_space<vmem>>, vector<1x1024xf32>
    tpu.vector_store %arg3[%c9_27, %c0_28], %157 {strides = array<i32>} : memref<11x1024xf32, #tpu.memory_space<vmem>>, vector<1x1024xf32>,
    %c36 = arith.constant 36 : index
    %159 = memref.load %arg1[%c36] : memref<44xf32, #tpu.memory_space<smem>>
    %160 = vector.broadcast %159 : f32 to vector<1x1024xf32>
    %161 = arith.mulf %160, %44 : vector<1x1024xf32>
    %c37 = arith.constant 37 : index
    %162 = memref.load %arg1[%c37] : memref<44xf32, #tpu.memory_space<smem>>
    %163 = vector.broadcast %162 : f32 to vector<1x1024xf32>
    %164 = arith.mulf %163, %61 : vector<1x1024xf32>
    %165 = arith.addf %161, %164 : vector<1x1024xf32>
    %c38 = arith.constant 38 : index
    %166 = memref.load %arg1[%c38] : memref<44xf32, #tpu.memory_space<smem>>
    %167 = vector.broadcast %166 : f32 to vector<1x1024xf32>
    %168 = arith.mulf %167, %78 : vector<1x1024xf32>
    %169 = arith.addf %165, %168 : vector<1x1024xf32>
    %c39 = arith.constant 39 : index
    %170 = memref.load %arg1[%c39] : memref<44xf32, #tpu.memory_space<smem>>
    %171 = vector.broadcast %170 : f32 to vector<1x1024xf32>
    %172 = arith.mulf %171, %95 : vector<1x1024xf32>
    %173 = arith.addf %169, %172 : vector<1x1024xf32>
    %c40 = arith.constant 40 : index
    %174 = memref.load %arg1[%c40] : memref<44xf32, #tpu.memory_space<smem>>
    %175 = vector.broadcast %174 : f32 to vector<1x1024xf32>
    %176 = arith.mulf %175, %112 : vector<1x1024xf32>
    %177 = arith.addf %173, %176 : vector<1x1024xf32>
    %c43 = arith.constant 43 : index
    %178 = memref.load %arg1[%c43] : memref<44xf32, #tpu.memory_space<smem>>
    %179 = vector.broadcast %178 : f32 to vector<1x1024xf32>
    %180 = arith.addf %177, %179 : vector<1x1024xf32>
    %c10_29 = arith.constant 10 : index
    %c0_30 = arith.constant 0 : index
    %181 = vector.load %arg3[%c10_29, %c0_30] : memref<11x1024xf32, #tpu.memory_space<vmem>>, vector<1x1024xf32>
    tpu.vector_store %arg3[%c10_29, %c0_30], %180 {strides = array<i32>} : memref<11x1024xf32, #tpu.memory_space<vmem>>, vector<1x1024xf32>,
    return
  }
  func.func @transform_0(%arg0: i32) -> i32 {
    %c0_i32 = arith.constant 0 : i32
    %c0_i32_0 = arith.constant 0 : i32
    return %c0_i32 : i32
  }
  func.func @transform_1(%arg0: i32) -> (i32, i32) {
    %c0_i32 = arith.constant 0 : i32
    %c0_i32_0 = arith.constant 0 : i32
    return %c0_i32, %arg0 : i32, i32
  }
  func.func @transform_2(%arg0: i32) -> (i32, i32) {
    %c0_i32 = arith.constant 0 : i32
    %c0_i32_0 = arith.constant 0 : i32
    return %c0_i32, %arg0 : i32, i32
  }
}

</mosaic_0001>

<bundles_post_ra>
// kernel: tpu_custom_call.1
= control target key start
LH: loop header
LB: loop body
LE: loop exit
PB: predicated region body
PF: predicated region fallthrough
CT: control target
= control target key end

     0   :  { %7 = vsyncpa [#allocation5], 0  ;;  %s526_s0 = inlined_call_operand.hbm [shape: f32[44], index: 0, kind: input, shape index: {}]   ;;  %s527_s1 = inlined_call_operand.hbm [shape: f32[1,1024], index: 1, kind: input, shape index: {}]   ;;  %s528_s2 = inlined_call_operand.hbm [shape: f32[11,1024], index: 2, kind: output, shape index: {}]  }
   0x1   :  { %8 = vsyncpa [#allocation3], 0 }
   0x2   :  { %9 = vsyncpa [#allocation4], 0  ;;  %s296_s11 = scalar_lea.hbm %s526_s0, 16 }
   0x3   :  { %p297_p0 = scmp.ne.s32.totalorder %s526_s0, %s296_s11  ;;  %p300_p1 = scmp.lt.u32.totalorder %s296_s11, %s526_s0 }
   0x5   :  { %p302_p2 = pnand %p300_p1, %p297_p0 }
   0x7   :  { %305 = shalt.err (!%p302_p2)
}
   0x8   :  { %s356_s16 = smov [#allocation2]   ;;  %s357_s19 = smov [#allocation6]  }
   0x9   :  { %17 = dma.hbm_to_smem %s526_s0, 16, %s356_s16, [#allocation5]  }
   0xa   :  { %s24_s20 = sshll.u32 %s357_s19, 4  ;;  %s306_s23 = scalar_lea.hbm %s527_s1, 128  ;;  %s25_s20 = int_to_ptr.vmem [resolvable:$true] %s24_s20 }
   0xb   :  { %p307_p3 = scmp.ne.s32.totalorder %s527_s1, %s306_s23  ;;  %p310_p4 = scmp.lt.u32.totalorder %s306_s23, %s527_s1 }
   0xd   :  { %p312_p5 = pnand %p310_p4, %p307_p3 }
   0xf   :  { %315 = shalt.err (!%p312_p5)
}
  0x10   :  { %s316_s28 = scalar_lea.vmem %s25_s20, 128  ;;  %p321_p7 = scmp.lt.s32.totalorder %s25_s20, %s25_s20 }
  0x11   :  { %p317_p6 = scmp.ne.s32.totalorder %s25_s20, %s316_s28  ;;  %p322_p8 = scmp.lt.s32.totalorder %s316_s28, %s316_s28 }
  0x13   :  { %p323_p9 = por %p322_p8, %p321_p7 }
  0x15   :  { %p324_p10 = pnand %p323_p9, %p317_p6 }
  0x17   :  { %327 = shalt.err (!%p324_p10)
}
  0x18   :  { %27 = dma.hbm_to_vmem [thread:$0]  %s527_s1, 128, %s25_s20, [#allocation3]  }
  0x19   :  { %350 = dma.done.wait [#allocation5], 16  }
  0x1a   :  { %351 = vsyncadd [#allocation5], 4294967280 }
  0x1b   :  { %352 = dma.done.wait [#allocation3], 128  }
  0x1c   :  { %353 = vsyncadd [#allocation3], 4294967168 }
  0x1d   :  { %34 = sfence }
  0x1e   :  { %s36_s30 = sld [smem:[#allocation2]]  ;;  %s248_s3 = sld [smem:[#allocation2 + $0x3]]  ;;  %v35_v0 = vld [vmem:[#allocation6] sm:$0xff] }
  0x1f   :  { %s249_s4 = sld [smem:[#allocation2 + $0x1]]  ;;  %s250_s5 = sld [smem:[#allocation2 + $0x4]] }
  0x20   :  { %s251_s6 = sld [smem:[#allocation2 + $0x2]]  ;;  %s400_s7 = sld [smem:[#allocation2 + $0x5]] }
  0x21   :  { %s402_s8 = sld [smem:[#allocation2 + $0x6]]  ;;  %s404_s9 = sld [smem:[#allocation2 + $0x7]] }
  0x22   :  { %s406_s10 = sld [smem:[#allocation2 + $0x8]]  ;;  %s408_s1 = sld [smem:[#allocation2 + $0x15]] }
  0x23   :  { %s410_s11 = sld [smem:[#allocation2 + $0x9]]  ;;  %s412_s12 = sld [smem:[#allocation2 + $0xa]] }
  0x24   :  { %v37_v1 = vstv %s36_s30  ;;  %v40_v2 = vstv %s248_s3  ;;  %s414_s13 = sld [smem:[#allocation2 + $0xb]]  ;;  %s416_s14 = sld [smem:[#allocation2 + $0x16]] }
  0x25   :  { %v38_v3 = vmul.f32 %v37_v1, %v35_v0  ;;  %v46_v4 = vstv %s249_s4  ;;  %v49_v5 = vstv %s250_s5  ;;  %s418_s15 = sld [smem:[#allocation2 + $0xc]]  ;;  %s420_s16 = sld [smem:[#allocation2 + $0xd]] }
  0x26   :  { %v47_v6 = vmul.f32 %v46_v4, %v35_v0  ;;  %v56_v7 = vstv %s251_s6  ;;  %v59_v8 = vstv %s400_s7  ;;  %s423_s17 = sld [smem:[#allocation2 + $0xe]]  ;;  %s425_s18 = sld [smem:[#allocation2 + $0x17]] }
  0x27   :  { %v41_v9 = vadd.f32 %v40_v2, %v38_v3  ;;  %v57_v10 = vmul.f32 %v56_v7, %v35_v0  ;;  %s427_s19 = sld [smem:[#allocation2 + $0xf]]  ;;  %s429_s20 = sld [smem:[#allocation2 + $0x10]]  ;;  %v66_v12 = vstv %s402_s8  ;;  %v69_v13 = vstv %s404_s9 }
  0x28   :  { %v50_v11 = vadd.f32 %v49_v5, %v47_v6  ;;  %v73_v14 = vstv %s406_s10  ;;  %s434_s21 = sld [smem:[#allocation2 + $0x11]]  ;;  %s438_s22 = sld [smem:[#allocation2 + $0x12]]  ;;  %v77_v20 = vstv %s408_s1 }
  0x29   :  { %42 = vst [vmem:[#allocation7] ss:$8 sm:$0xf] %v41_v9  ;;  %v44_v15 = vmax.f32 %v41_v9, 0.0  ;;  %v60_v16 = vadd.f32 %v59_v8, %v57_v10  ;;  %v84_v17 = vstv %s410_s11  ;;  %v87_v18 = vstv %s412_s12  ;;  %s443_s23 = sld [smem:[#allocation2 + $0x18]]  ;;  %s446_s24 = sld [smem:[#allocation2 + $0x13]] }
  0x2a   :  { %43 = vst [vmem:[#allocation7] ss:$8 sm:$0xf0] %v41_v9  ;;  %52 = vst [vmem:[#allocation7 + $0x1] ss:$8 sm:$0xf] %v50_v11  ;;  %v91_v21 = vstv %s414_s13  ;;  %v95_v22 = vstv %s416_s14 }
  0x2b   :  { %v54_v19 = vmax.f32 %v50_v11, 0.0  ;;  %53 = vst [vmem:[#allocation7 + $0x1] ss:$8 sm:$0xf0] %v50_v11  ;;  %v64_v23 = vmax.f32 %v60_v16, 0.0  ;;  %v67_v24 = vmul.f32 %v66_v12, %v44_v15  ;;  %v85_v25 = vmul.f32 %v84_v17, %v44_v15  ;;  %s448_s25 = sld [smem:[#allocation2 + $0x14]] }
  0x2c   :  { %62 = vst [vmem:[#allocation7 + $0x2] ss:$8 sm:$0xf] %v60_v16  ;;  %63 = vst [vmem:[#allocation7 + $0x2] ss:$8 sm:$0xf0] %v60_v16  ;;  %v102_v26 = vstv %s418_s15  ;;  %v105_v30 = vstv %s420_s16  ;;  %v109_v34 = vstv %s423_s17  ;;  %v113_v38 = vstv %s425_s18 }
  0x2d   :  { %v70_v27 = vmul.f32 %v69_v13, %v54_v19  ;;  %v88_v28 = vmul.f32 %v87_v18, %v54_v19  ;;  %v103_v29 = vmul.f32 %v102_v26, %v44_v15  ;;  %v74_v31 = vmul.f32 %v73_v14, %v64_v23  ;;  %s452_s26 = sld [smem:[#allocation2 + $0x1a]]  ;;  %s454_s27 = sld [smem:[#allocation2 + $0x1b]] }
  0x2e   :  { %v92_v32 = vmul.f32 %v91_v21, %v64_v23  ;;  %v106_v33 = vmul.f32 %v105_v30, %v54_v19  ;;  %v110_v37 = vmul.f32 %v109_v34, %v64_v23  ;;  %s457_s28 = sld [smem:[#allocation2 + $0x19]]  ;;  %v120_v40 = vstv %s427_s19  ;;  %s462_s0 = sld [smem:[#allocation2 + $0x1c]] }
  0x2f   :  { %v71_v35 = vadd.f32 %v70_v27, %v67_v24  ;;  %v89_v36 = vadd.f32 %v88_v28, %v85_v25  ;;  %v123_v41 = vstv %s429_s20  ;;  %v127_v42 = vstv %s434_s21  ;;  %s464_s29 = sld [smem:[#allocation2 + $0x1d]]  ;;  %s466_s30 = sld [smem:[#allocation2 + $0x1f]] }
  0x30   :  { %v107_v39 = vadd.f32 %v106_v33, %v103_v29  ;;  %v121_v45 = vmul.f32 %v120_v40, %v44_v15  ;;  %v124_v46 = vmul.f32 %v123_v41, %v54_v19  ;;  %s468_s3 = sld [smem:[#allocation2 + $0x20]]  ;;  %v128_v48 = vmul.f32 %v127_v42, %v64_v23  ;;  %s471_s4 = sld [smem:[#allocation2 + $0x21]] }
  0x31   :  { %v75_v43 = vadd.f32 %v74_v31, %v71_v35  ;;  %v93_v44 = vadd.f32 %v92_v32, %v89_v36  ;;  %v138_v49 = vstv %s438_s22  ;;  %s473_s5 = sld [smem:[#allocation2 + $0x22]]  ;;  %v131_v55 = vstv %s443_s23  ;;  %s478_s6 = sld [smem:[#allocation2 + $0x1e]] }
  0x32   :  { %v111_v47 = vadd.f32 %v110_v37, %v107_v39  ;;  %v125_v52 = vadd.f32 %v124_v46, %v121_v45  ;;  %v139_v53 = vmul.f32 %v138_v49, %v44_v15  ;;  %v141_v56 = vstv %s446_s24  ;;  %s480_s7 = sld [smem:[#allocation2 + $0x23]]  ;;  %s482_s8 = sld [smem:[#allocation2 + $0x24]] }
  0x33   :  { %v78_v50 = vadd.f32 %v77_v20, %v75_v43  ;;  %v96_v51 = vadd.f32 %v95_v22, %v93_v44  ;;  %v145_v57 = vstv %s448_s25  ;;  %v142_v61 = vmul.f32 %v141_v56, %v54_v19  ;;  %s486_s9 = sld [smem:[#allocation2 + $0x25]]  ;;  %s488_s10 = sld [smem:[#allocation2 + $0x26]] }
  0x34   :  { %v114_v54 = vadd.f32 %v113_v38, %v111_v47  ;;  %v129_v60 = vadd.f32 %v128_v48, %v125_v52  ;;  %v146_v63 = vmul.f32 %v145_v57, %v64_v23  ;;  %v156_v0 = vstv %s452_s26  ;;  %s490_s1 = sld [smem:[#allocation2 + $0x29]]  ;;  %s495_s11 = sld [smem:[#allocation2 + $0x27]] }
  0x35   :  { %80 = vst [vmem:[#allocation7 + $0x3] ss:$8 sm:$0xf] %v78_v50  ;;  %v82_v58 = vmax.f32 %v78_v50, 0.0  ;;  %v100_v59 = vmax.f32 %v96_v51, 0.0  ;;  %v159_v1 = vstv %s454_s27  ;;  %v143_v3 = vadd.f32 %v142_v61, %v139_v53  ;;  %s497_s12 = sld [smem:[#allocation2 + $0x28]] }
  0x36   :  { %81 = vst [vmem:[#allocation7 + $0x3] ss:$8 sm:$0xf0] %v78_v50  ;;  %98 = vst [vmem:[#allocation7 + $0x4] ss:$8 sm:$0xf] %v96_v51  ;;  %v132_v2 = vadd.f32 %v131_v55, %v129_v60  ;;  %v149_v6 = vstv %s457_s28  ;;  %v163_v7 = vstv %s462_s0  ;;  %v167_v8 = vstv %s464_s29 }
  0x37   :  { %99 = vst [vmem:[#allocation7 + $0x4] ss:$8 sm:$0xf0] %v96_v51  ;;  %116 = vst [vmem:[#allocation7 + $0x5] ss:$8 sm:$0xf] %v114_v54  ;;  %v157_v4 = vmul.f32 %v156_v0, %v82_v58  ;;  %v160_v5 = vmul.f32 %v159_v1, %v100_v59  ;;  %v147_v10 = vadd.f32 %v146_v63, %v143_v3  ;;  %v181_v13 = vstv %s466_s30 }
  0x38   :  { %v118_v62 = vmax.f32 %v114_v54, 0.0  ;;  %117 = vst [vmem:[#allocation7 + $0x5] ss:$8 sm:$0xf0] %v114_v54  ;;  %v136_v9 = vmax.f32 %v132_v2, 0.0  ;;  %v184_v14 = vstv %s468_s3  ;;  %v188_v15 = vstv %s471_s4  ;;  %s503_s13 = sld [smem:[#allocation2 + $0x2a]] }
  0x39   :  { %134 = vst [vmem:[#allocation7 + $0x6] ss:$8 sm:$0xf] %v132_v2  ;;  %135 = vst [vmem:[#allocation7 + $0x6] ss:$8 sm:$0xf0] %v132_v2  ;;  %v161_v11 = vadd.f32 %v160_v5, %v157_v4  ;;  %v192_v16 = vstv %s473_s5  ;;  %v150_v17 = vadd.f32 %v149_v6, %v147_v10  ;;  %v182_v20 = vmul.f32 %v181_v13, %v82_v58 }
  0x3a   :  { %v164_v12 = vmul.f32 %v163_v7, %v118_v62  ;;  %v168_v19 = vmul.f32 %v167_v8, %v136_v9  ;;  %v171_v21 = vstv %s478_s6  ;;  %v185_v22 = vmul.f32 %v184_v14, %v100_v59  ;;  %s290_s14 = sld [smem:[#allocation2 + $0x2b]]  ;;  %s358_s15 = smov [#allocation7]  }
  0x3b   :  { %v189_v23 = vmul.f32 %v188_v15, %v118_v62  ;;  %v193_v24 = vmul.f32 %v192_v16, %v136_v9  ;;  %152 = vst [vmem:[#allocation7 + $0x7] ss:$8 sm:$0xf] %v150_v17  ;;  %v154_v25 = vmax.f32 %v150_v17, 0.0  ;;  %v196_v27 = vstv %s480_s7  ;;  %s235_s16 = sshll.u32 %s358_s15, 4  ;;  %s236_s16 = int_to_ptr.vmem [resolvable:$true] %s235_s16 }
  0x3c   :  { %v165_v18 = vadd.f32 %v164_v12, %v161_v11  ;;  %153 = vst [vmem:[#allocation7 + $0x7] ss:$8 sm:$0xf0] %v150_v17  ;;  %v206_v28 = vstv %s482_s8  ;;  %v186_v29 = vadd.f32 %v185_v22, %v182_v20  ;;  %v209_v31 = vstv %s486_s9  ;;  %s328_s17 = scalar_lea.vmem %s236_s16, 2048  ;;  %p333_p12 = scmp.lt.s32.totalorder %s236_s16, %s236_s16 }
  0x3d   :  { %v207_v30 = vmul.f32 %v206_v28, %v82_v58  ;;  %v213_v32 = vstv %s488_s10  ;;  %v172_v33 = vmul.f32 %v171_v21, %v154_v25  ;;  %v175_v34 = vstv %s490_s1  ;;  %p329_p11 = scmp.ne.s32.totalorder %s236_s16, %s328_s17  ;;  %p334_p13 = scmp.lt.s32.totalorder %s328_s17, %s328_s17 }
  0x3e   :  { %v169_v26 = vadd.f32 %v168_v19, %v165_v18  ;;  %v210_v35 = vmul.f32 %v209_v31, %v100_v59  ;;  %v214_v36 = vmul.f32 %v213_v32, %v118_v62  ;;  %v190_v37 = vadd.f32 %v189_v23, %v186_v29 }
  0x3f   :  { %v197_v38 = vmul.f32 %v196_v27, %v154_v25  ;;  %v217_v39 = vstv %s495_s11  ;;  %v221_v40 = vstv %s497_s12  ;;  %v200_v46 = vstv %s503_s13  ;;  %p335_p0 = por %p334_p13, %p333_p12 }
  0x40   :  { %v173_v41 = vadd.f32 %v172_v33, %v169_v26  ;;  %v211_v42 = vadd.f32 %v210_v35, %v207_v30  ;;  %v218_v43 = vmul.f32 %v217_v39, %v136_v9  ;;  %v194_v44 = vadd.f32 %v193_v24, %v190_v37 }
  0x41   :  { %v222_v48 = vmul.f32 %v221_v40, %v154_v25  ;;  %v225_v52 = vstv %s290_s14  ;;  %p336_p1 = pnand %p335_p0, %p329_p11 }
  0x42   :  { %v176_v45 = vadd.f32 %v175_v34, %v173_v41  ;;  %v215_v47 = vadd.f32 %v214_v36, %v211_v42  ;;  %v198_v49 = vadd.f32 %v197_v38, %v194_v44 }
  0x44   :  { %178 = vst [vmem:[#allocation7 + $0x40] ss:$8 sm:$0xf] %v176_v45  ;;  %179 = vst [vmem:[#allocation7 + $0x40] ss:$8 sm:$0xf0] %v176_v45  ;;  %v219_v50 = vadd.f32 %v218_v43, %v215_v47  ;;  %v201_v51 = vadd.f32 %v200_v46, %v198_v49 }
  0x46   :  { %v223_v53 = vadd.f32 %v222_v48, %v219_v50  ;;  %203 = vst [vmem:[#allocation7 + $0x41] ss:$8 sm:$0xf] %v201_v51  ;;  %204 = vst [vmem:[#allocation7 + $0x41] ss:$8 sm:$0xf0] %v201_v51 }
  0x48   :  { %v226_v54 = vadd.f32 %v225_v52, %v223_v53 }
  0x4a   :  { %228 = vst [vmem:[#allocation7 + $0x42] ss:$8 sm:$0xf] %v226_v54  ;;  %229 = vst [vmem:[#allocation7 + $0x42] ss:$8 sm:$0xf0] %v226_v54 }
  0x4b   :  { %339 = shalt.err (!%p336_p1)
}
  0x4c   :  { %s340_s20 = scalar_lea.hbm %s528_s2, 2048 }
  0x4d   :  { %p341_p2 = scmp.ne.s32.totalorder %s528_s2, %s340_s20  ;;  %p344_p3 = scmp.lt.u32.totalorder %s340_s20, %s528_s2 }
  0x4f   :  { %p346_p4 = pnand %p344_p3, %p341_p2 }
  0x51   :  { %349 = shalt.err (!%p346_p4)
}
  0x52   :  { %s359_s25 = smov 1024   ;;  %s360_s26 = smov 64  }
  0x53   :  { %241 = dma.vmem_to_hbm [thread:$0]  %s236_s16, 2048, %s528_s2, [#allocation4], %s359_s25, %s359_s25, %s360_s26  }
  0x54   :  { %354 = dma.done.wait [#allocation4], 2048  }
  0x55   :  { %355 = vsyncadd [#allocation4], 4294965248 }
  0x56   :  { %245 = vsyncpa [#allocation3], 1 }
  0x57   :  { %246 = vsyncpa [#allocation4], 1 }
  0x58   :  { %247 = vsyncpa [#allocation5], 1 }

</bundles_post_ra>
